<compile_context>
chip_gen: v5e
topology: v5e:2x2
jax: 0.10.0
libtpu: 0.0.40
codegen_flags: <defaults>
</compile_context>

<pallas_src>
import functools
import math

import jax
import jax.numpy as jnp
from jax.experimental import pallas as pl
from jax.experimental.pallas import tpu as pltpu

_PI = 3.14159265358979323846
_COS_EPS = 1e-8  # torch.nn.CosineSimilarity default eps


def _ceil_to(x, m):
    return ((x + m - 1) // m) * m


# ----------------------------------------------------------------------------- in-kernel math
def _recip(x):
    """1/x via EUP approx reciprocal + one Newton refinement (keeps VALU free, ~f32 accurate)."""
    r = pl.reciprocal(x, approx=True)
    return r * (2.0 - x * r)


def _atan_nonneg(x):
    """Cephes-style float32 arctan for x >= 0 (abs err ~1e-7). Only +,*,recip,select."""
    t3p8 = 2.414213562373095   # tan(3*pi/8)
    tp8 = 0.4142135623730951   # tan(pi/8)
    big = x > t3p8
    mid = jnp.logical_and(jnp.logical_not(big), x > tp8)
    safe = jnp.maximum(x, 1e-20)
    inv = _recip(safe)                       # ~ 1/x   (only used where big)
    inv1 = _recip(x + 1.0)                   # 1/(x+1), x >= 0 so safe
    xr = jnp.where(big, -inv, jnp.where(mid, (x - 1.0) * inv1, x))
    y0 = jnp.where(big, _PI / 2.0, jnp.where(mid, _PI / 4.0, 0.0))
    z = xr * xr
    p = ((8.05374449538e-2 * z - 1.38776856032e-1) * z + 1.99777106478e-1) * z - 3.33329491539e-1
    return y0 + p * z * xr + xr


def _arccos(c):
    """arccos(c) = 2*atan(sqrt((1-c)/(1+c))); avoids unsupported acos lowering."""
    c = jnp.clip(c, -1.0, 1.0)
    ratio = (1.0 - c) * _recip(jnp.maximum(1.0 + c, 1e-12))
    r = jnp.sqrt(jnp.maximum(ratio, 0.0))
    return 2.0 * _atan_nonneg(r)


# ----------------------------------------------------------------------------- Pallas kernel
def _em_angle_kernel(st_ref, a_ref, u_ref, t_ref, ang_ref, *, safe_scale):
    """One grid step = TB batch elements.

    st_ref : (C, TB, S)      standard-normal samples, transposed so S is lane-dense
    a_ref  : (C, C, TB, 1)   a[i, k, b] = beta * sqrt(T) * chol(cov_b + eps I)[i, k]
    u_ref  : (C, TB, 1)      beta * T * mean
    t_ref  : (C, TB, 1)      target
    ang_ref: (TB, S)         per-(batch, sample) arccos(cos * safe_scale)
    """
    c, tb, s = st_ref.shape

    # C lane-dense sample planes (TB, S).
    st = [st_ref[k] for k in range(c)]

    num = jnp.zeros((tb, s), jnp.float32)     # <ts, target>
    ts_sq = jnp.zeros((tb, s), jnp.float32)   # ||ts||^2
    t_sq = jnp.zeros((tb, 1), jnp.float32)    # ||target||^2

    # Gaussian reparameterization + cosine partials, fully unrolled over the tiny class axis.
    # Each term is a (TB,1)-scalar-per-batch broadcast FMA on a full (TB, S) vreg plane — no MXU.
    for i in range(c):
        ts_i = jnp.broadcast_to(u_ref[i], (tb, s))            # (TB, S)
        for k in range(c):
            ts_i = ts_i + a_ref[i, k] * st[k]                  # (TB,1) * (TB,S)
        t_i = t_ref[i]                                         # (TB, 1)
        num = num + ts_i * t_i
        ts_sq = ts_sq + ts_i * ts_i
        t_sq = t_sq + t_i * t_i

    # Cosine similarity (torch.nn.CosineSimilarity semantics) and arccos, on (TB, S) vregs.
    den = jnp.sqrt(ts_sq * t_sq)
    cos = num * _recip(jnp.maximum(den, _COS_EPS))
    ang_ref[...] = _arccos(cos * safe_scale)


# ----------------------------------------------------------------------------- wrapper (glue)
def sample_based_em_loss(u, cov, target, sample, *, eps=1e-4, beta=1.0,
                         decoding_time=1.0, safe_scale=0.99, reduction="mean"):
    B, S, C = sample.shape
    assert u.shape == (B, C) and cov.shape == (B, C, C) and target.shape == (B, C)
    f32 = jnp.float32

    # Tiny (C x C) Cholesky + one-time transposes stay in plain JAX (parameter setup / glue).
    chol = jnp.linalg.cholesky(cov.astype(f32) + jnp.eye(C, dtype=f32) * eps)        # (B, C, C)
    a_r = jnp.transpose(chol * f32(beta * math.sqrt(decoding_time)), (1, 2, 0))[..., None]  # (C,C,B,1)
    u_r = jnp.transpose(u.astype(f32) * f32(beta * decoding_time))[..., None]        # (C, B, 1)
    t_r = jnp.transpose(target.astype(f32))[..., None]                               # (C, B, 1)
    st = jnp.transpose(sample.astype(f32), (2, 0, 1))                                # (C, B, S)

    # Batch-block size: 8..32 batch elements per grid step (amortizes per-step overhead and
    # fills vreg sublanes on the (TB, S) angle path). Pad B and S; padding is sliced off after.
    tb = min(32, _ceil_to(B, 8))
    b_pad = _ceil_to(B, tb)
    s_pad = _ceil_to(S, 128)
    pb, ps = b_pad - B, s_pad - S
    if pb or ps:
        st = jnp.pad(st, ((0, 0), (0, pb), (0, ps)))
        a_r = jnp.pad(a_r, ((0, 0), (0, 0), (0, pb), (0, 0)))
        u_r = jnp.pad(u_r, ((0, 0), (0, pb), (0, 0)))
        t_r = jnp.pad(t_r, ((0, 0), (0, pb), (0, 0)))

    kernel = functools.partial(_em_angle_kernel, safe_scale=float(safe_scale))

    angles = pl.pallas_call(
        kernel,
        out_shape=jax.ShapeDtypeStruct((b_pad, s_pad), f32),
        grid_spec=pltpu.PrefetchScalarGridSpec(
            num_scalar_prefetch=0,
            grid=(b_pad // tb,),
            in_specs=[
                pl.BlockSpec((C, tb, s_pad), lambda g: (0, g, 0)),     # samples^T (lane = S)
                pl.BlockSpec((C, C, tb, 1), lambda g: (0, 0, g, 0)),   # beta*sqrt(T)*chol
                pl.BlockSpec((C, tb, 1), lambda g: (0, g, 0)),         # beta*T*mean
                pl.BlockSpec((C, tb, 1), lambda g: (0, g, 0)),         # target
            ],
            out_specs=pl.BlockSpec((tb, s_pad), lambda g: (g, 0)),     # lane-dense angle block
        ),
        compiler_params=pltpu.CompilerParams(dimension_semantics=("parallel",)),
    )(st, a_r, u_r, t_r)

    # Final reduction (tiny) in the wrapper: mean over samples, then mean/sum over batch.
    ang = angles[:B, :S]
    per_batch = jnp.mean(ang, axis=-1)
    return jnp.sum(per_batch) if reduction == "sum" else jnp.mean(per_batch)


# ----------------------------------------------------------------------------- pure-JAX reference
def reference_loss(u, cov, target, sample, *, eps=1e-4, beta=1.0,
                   decoding_time=1.0, safe_scale=0.99):
    B, S, C = sample.shape
    chol = jnp.linalg.cholesky(cov + jnp.eye(C, dtype=jnp.float32) * eps)
    ts = (jnp.einsum("bsc,bkc->bsk", sample, chol) * math.sqrt(decoding_time)
          + (u * decoding_time)[:, None, :]) * beta
    tgt = jnp.broadcast_to(target[:, None, :], ts.shape)
    num = jnp.sum(ts * tgt, axis=-1)
    den = jnp.maximum(jnp.linalg.norm(ts, axis=-1) * jnp.linalg.norm(tgt, axis=-1), _COS_EPS)
    ang = jnp.arccos((num / den) * safe_scale)
    return jnp.mean(jnp.mean(ang, axis=-1))


if __name__ == "__main__":
    B, S, C = 2, 128, 4   # batch, num_sample (module default 1000, small here), num_class

    key = jax.random.PRNGKey(0)
    k1, k2, k3, k4 = jax.random.split(key, 4)
    u = jax.random.normal(k1, (B, C), jnp.float32)
    a = jax.random.normal(k2, (B, C, C), jnp.float32) * 0.3
    cov = jnp.einsum("bij,bkj->bik", a, a) + 0.5 * jnp.eye(C, dtype=jnp.float32)   # SPD
    target = jax.nn.softmax(jax.random.normal(k3, (B, C), jnp.float32), axis=-1)
    sample = jax.random.normal(k4, (B, S, C), jnp.float32)   # stands in for torch.randn

    loss = sample_based_em_loss(u, cov, target, sample)
    loss = jax.block_until_ready(loss)

    ref = reference_loss(u, cov, target, sample)
    assert jnp.isfinite(loss), f"non-finite loss: {loss}"
    assert abs(float(loss) - float(ref)) < 1e-3, f"kernel {float(loss)} vs ref {float(ref)}"

    print("KERNEL_OK")
</pallas_src>

<mosaic_0001>
module attributes {stable_mosaic.version = 11 : i64} {
  func.func @_em_angle_kernel(%arg0: i32, %arg1: memref<4x8x128xf32, #tpu.memory_space<vmem>>, %arg2: memref<4x4x8x1xf32, #tpu.memory_space<vmem>>, %arg3: memref<4x8x1xf32, #tpu.memory_space<vmem>>, %arg4: memref<4x8x1xf32, #tpu.memory_space<vmem>>, %arg5: memref<8x128xf32, #tpu.memory_space<vmem>>) attributes {dimension_semantics = [#tpu.dimension_semantics<parallel>], iteration_bounds = array<i64: 1>, scalar_prefetch = 0 : i64, scratch_operands = 0 : i64, tpu.core_type = #tpu.core_type<tc>, window_params = [{transform_indices = @transform_0, window_bounds = array<i64: 4, 8, 128>}, {transform_indices = @transform_1, window_bounds = array<i64: 4, 4, 8, 1>}, {transform_indices = @transform_2, window_bounds = array<i64: 4, 8, 1>}, {transform_indices = @transform_3, window_bounds = array<i64: 4, 8, 1>}, {transform_indices = @transform_4, window_bounds = array<i64: 8, 128>}]} {
    %c0 = arith.constant 0 : index
    %c0_0 = arith.constant 0 : index
    %c0_1 = arith.constant 0 : index
    %0 = vector.load %arg1[%c0, %c0_0, %c0_1] : memref<4x8x128xf32, #tpu.memory_space<vmem>>, vector<1x8x128xf32>
    %1 = vector.shape_cast %0 : vector<1x8x128xf32> to vector<8x128xf32>
    %c1 = arith.constant 1 : index
    %c0_2 = arith.constant 0 : index
    %c0_3 = arith.constant 0 : index
    %2 = vector.load %arg1[%c1, %c0_2, %c0_3] : memref<4x8x128xf32, #tpu.memory_space<vmem>>, vector<1x8x128xf32>
    %3 = vector.shape_cast %2 : vector<1x8x128xf32> to vector<8x128xf32>
    %c2 = arith.constant 2 : index
    %c0_4 = arith.constant 0 : index
    %c0_5 = arith.constant 0 : index
    %4 = vector.load %arg1[%c2, %c0_4, %c0_5] : memref<4x8x128xf32, #tpu.memory_space<vmem>>, vector<1x8x128xf32>
    %5 = vector.shape_cast %4 : vector<1x8x128xf32> to vector<8x128xf32>
    %c3 = arith.constant 3 : index
    %c0_6 = arith.constant 0 : index
    %c0_7 = arith.constant 0 : index
    %6 = vector.load %arg1[%c3, %c0_6, %c0_7] : memref<4x8x128xf32, #tpu.memory_space<vmem>>, vector<1x8x128xf32>
    %7 = vector.shape_cast %6 : vector<1x8x128xf32> to vector<8x128xf32>
    %cst = arith.constant 0.000000e+00 : f32
    %8 = vector.broadcast %cst : f32 to vector<8x128xf32>
    %cst_8 = arith.constant 0.000000e+00 : f32
    %9 = vector.broadcast %cst_8 : f32 to vector<8x128xf32>
    %cst_9 = arith.constant 0.000000e+00 : f32
    %10 = vector.broadcast %cst_9 : f32 to vector<8x1xf32>
    %c0_10 = arith.constant 0 : index
    %c0_11 = arith.constant 0 : index
    %c0_12 = arith.constant 0 : index
    %11 = vector.load %arg3[%c0_10, %c0_11, %c0_12] : memref<4x8x1xf32, #tpu.memory_space<vmem>>, vector<1x8x1xf32>
    %12 = vector.shape_cast %11 : vector<1x8x1xf32> to vector<8x1xf32>
    %13 = vector.shape_cast %12 : vector<8x1xf32> to vector<8x1xf32>
    %14 = vector.broadcast %13 : vector<8x1xf32> to vector<8x128xf32>
    %c0_13 = arith.constant 0 : index
    %c0_14 = arith.constant 0 : index
    %c0_15 = arith.constant 0 : index
    %c0_16 = arith.constant 0 : index
    %15 = vector.load %arg2[%c0_13, %c0_14, %c0_15, %c0_16] : memref<4x4x8x1xf32, #tpu.memory_space<vmem>>, vector<1x1x8x1xf32>
    %16 = vector.shape_cast %15 : vector<1x1x8x1xf32> to vector<8x1xf32>
    %17 = vector.broadcast %16 : vector<8x1xf32> to vector<8x128xf32>
    %18 = arith.mulf %17, %1 : vector<8x128xf32>
    %19 = arith.addf %14, %18 : vector<8x128xf32>
    %c0_17 = arith.constant 0 : index
    %c1_18 = arith.constant 1 : index
    %c0_19 = arith.constant 0 : index
    %c0_20 = arith.constant 0 : index
    %20 = vector.load %arg2[%c0_17, %c1_18, %c0_19, %c0_20] : memref<4x4x8x1xf32, #tpu.memory_space<vmem>>, vector<1x1x8x1xf32>
    %21 = vector.shape_cast %20 : vector<1x1x8x1xf32> to vector<8x1xf32>
    %22 = vector.broadcast %21 : vector<8x1xf32> to vector<8x128xf32>
    %23 = arith.mulf %22, %3 : vector<8x128xf32>
    %24 = arith.addf %19, %23 : vector<8x128xf32>
    %c0_21 = arith.constant 0 : index
    %c2_22 = arith.constant 2 : index
    %c0_23 = arith.constant 0 : index
    %c0_24 = arith.constant 0 : index
    %25 = vector.load %arg2[%c0_21, %c2_22, %c0_23, %c0_24] : memref<4x4x8x1xf32, #tpu.memory_space<vmem>>, vector<1x1x8x1xf32>
    %26 = vector.shape_cast %25 : vector<1x1x8x1xf32> to vector<8x1xf32>
    %27 = vector.broadcast %26 : vector<8x1xf32> to vector<8x128xf32>
    %28 = arith.mulf %27, %5 : vector<8x128xf32>
    %29 = arith.addf %24, %28 : vector<8x128xf32>
    %c0_25 = arith.constant 0 : index
    %c3_26 = arith.constant 3 : index
    %c0_27 = arith.constant 0 : index
    %c0_28 = arith.constant 0 : index
    %30 = vector.load %arg2[%c0_25, %c3_26, %c0_27, %c0_28] : memref<4x4x8x1xf32, #tpu.memory_space<vmem>>, vector<1x1x8x1xf32>
    %31 = vector.shape_cast %30 : vector<1x1x8x1xf32> to vector<8x1xf32>
    %32 = vector.broadcast %31 : vector<8x1xf32> to vector<8x128xf32>
    %33 = arith.mulf %32, %7 : vector<8x128xf32>
    %34 = arith.addf %29, %33 : vector<8x128xf32>
    %c0_29 = arith.constant 0 : index
    %c0_30 = arith.constant 0 : index
    %c0_31 = arith.constant 0 : index
    %35 = vector.load %arg4[%c0_29, %c0_30, %c0_31] : memref<4x8x1xf32, #tpu.memory_space<vmem>>, vector<1x8x1xf32>
    %36 = vector.shape_cast %35 : vector<1x8x1xf32> to vector<8x1xf32>
    %37 = vector.broadcast %36 : vector<8x1xf32> to vector<8x128xf32>
    %38 = arith.mulf %34, %37 : vector<8x128xf32>
    %39 = arith.addf %8, %38 : vector<8x128xf32>
    %40 = arith.mulf %34, %34 : vector<8x128xf32>
    %41 = arith.addf %9, %40 : vector<8x128xf32>
    %42 = arith.mulf %36, %36 : vector<8x1xf32>
    %43 = arith.addf %10, %42 : vector<8x1xf32>
    %c1_32 = arith.constant 1 : index
    %c0_33 = arith.constant 0 : index
    %c0_34 = arith.constant 0 : index
    %44 = vector.load %arg3[%c1_32, %c0_33, %c0_34] : memref<4x8x1xf32, #tpu.memory_space<vmem>>, vector<1x8x1xf32>
    %45 = vector.shape_cast %44 : vector<1x8x1xf32> to vector<8x1xf32>
    %46 = vector.shape_cast %45 : vector<8x1xf32> to vector<8x1xf32>
    %47 = vector.broadcast %46 : vector<8x1xf32> to vector<8x128xf32>
    %c1_35 = arith.constant 1 : index
    %c0_36 = arith.constant 0 : index
    %c0_37 = arith.constant 0 : index
    %c0_38 = arith.constant 0 : index
    %48 = vector.load %arg2[%c1_35, %c0_36, %c0_37, %c0_38] : memref<4x4x8x1xf32, #tpu.memory_space<vmem>>, vector<1x1x8x1xf32>
    %49 = vector.shape_cast %48 : vector<1x1x8x1xf32> to vector<8x1xf32>
    %50 = vector.broadcast %49 : vector<8x1xf32> to vector<8x128xf32>
    %51 = arith.mulf %50, %1 : vector<8x128xf32>
    %52 = arith.addf %47, %51 : vector<8x128xf32>
    %c1_39 = arith.constant 1 : index
    %c1_40 = arith.constant 1 : index
    %c0_41 = arith.constant 0 : index
    %c0_42 = arith.constant 0 : index
    %53 = vector.load %arg2[%c1_39, %c1_40, %c0_41, %c0_42] : memref<4x4x8x1xf32, #tpu.memory_space<vmem>>, vector<1x1x8x1xf32>
    %54 = vector.shape_cast %53 : vector<1x1x8x1xf32> to vector<8x1xf32>
    %55 = vector.broadcast %54 : vector<8x1xf32> to vector<8x128xf32>
    %56 = arith.mulf %55, %3 : vector<8x128xf32>
    %57 = arith.addf %52, %56 : vector<8x128xf32>
    %c1_43 = arith.constant 1 : index
    %c2_44 = arith.constant 2 : index
    %c0_45 = arith.constant 0 : index
    %c0_46 = arith.constant 0 : index
    %58 = vector.load %arg2[%c1_43, %c2_44, %c0_45, %c0_46] : memref<4x4x8x1xf32, #tpu.memory_space<vmem>>, vector<1x1x8x1xf32>
    %59 = vector.shape_cast %58 : vector<1x1x8x1xf32> to vector<8x1xf32>
    %60 = vector.broadcast %59 : vector<8x1xf32> to vector<8x128xf32>
    %61 = arith.mulf %60, %5 : vector<8x128xf32>
    %62 = arith.addf %57, %61 : vector<8x128xf32>
    %c1_47 = arith.constant 1 : index
    %c3_48 = arith.constant 3 : index
    %c0_49 = arith.constant 0 : index
    %c0_50 = arith.constant 0 : index
    %63 = vector.load %arg2[%c1_47, %c3_48, %c0_49, %c0_50] : memref<4x4x8x1xf32, #tpu.memory_space<vmem>>, vector<1x1x8x1xf32>
    %64 = vector.shape_cast %63 : vector<1x1x8x1xf32> to vector<8x1xf32>
    %65 = vector.broadcast %64 : vector<8x1xf32> to vector<8x128xf32>
    %66 = arith.mulf %65, %7 : vector<8x128xf32>
    %67 = arith.addf %62, %66 : vector<8x128xf32>
    %c1_51 = arith.constant 1 : index
    %c0_52 = arith.constant 0 : index
    %c0_53 = arith.constant 0 : index
    %68 = vector.load %arg4[%c1_51, %c0_52, %c0_53] : memref<4x8x1xf32, #tpu.memory_space<vmem>>, vector<1x8x1xf32>
    %69 = vector.shape_cast %68 : vector<1x8x1xf32> to vector<8x1xf32>
    %70 = vector.broadcast %69 : vector<8x1xf32> to vector<8x128xf32>
    %71 = arith.mulf %67, %70 : vector<8x128xf32>
    %72 = arith.addf %39, %71 : vector<8x128xf32>
    %73 = arith.mulf %67, %67 : vector<8x128xf32>
    %74 = arith.addf %41, %73 : vector<8x128xf32>
    %75 = arith.mulf %69, %69 : vector<8x1xf32>
    %76 = arith.addf %43, %75 : vector<8x1xf32>
    %c2_54 = arith.constant 2 : index
    %c0_55 = arith.constant 0 : index
    %c0_56 = arith.constant 0 : index
    %77 = vector.load %arg3[%c2_54, %c0_55, %c0_56] : memref<4x8x1xf32, #tpu.memory_space<vmem>>, vector<1x8x1xf32>
    %78 = vector.shape_cast %77 : vector<1x8x1xf32> to vector<8x1xf32>
    %79 = vector.shape_cast %78 : vector<8x1xf32> to vector<8x1xf32>
    %80 = vector.broadcast %79 : vector<8x1xf32> to vector<8x128xf32>
    %c2_57 = arith.constant 2 : index
    %c0_58 = arith.constant 0 : index
    %c0_59 = arith.constant 0 : index
    %c0_60 = arith.constant 0 : index
    %81 = vector.load %arg2[%c2_57, %c0_58, %c0_59, %c0_60] : memref<4x4x8x1xf32, #tpu.memory_space<vmem>>, vector<1x1x8x1xf32>
    %82 = vector.shape_cast %81 : vector<1x1x8x1xf32> to vector<8x1xf32>
    %83 = vector.broadcast %82 : vector<8x1xf32> to vector<8x128xf32>
    %84 = arith.mulf %83, %1 : vector<8x128xf32>
    %85 = arith.addf %80, %84 : vector<8x128xf32>
    %c2_61 = arith.constant 2 : index
    %c1_62 = arith.constant 1 : index
    %c0_63 = arith.constant 0 : index
    %c0_64 = arith.constant 0 : index
    %86 = vector.load %arg2[%c2_61, %c1_62, %c0_63, %c0_64] : memref<4x4x8x1xf32, #tpu.memory_space<vmem>>, vector<1x1x8x1xf32>
    %87 = vector.shape_cast %86 : vector<1x1x8x1xf32> to vector<8x1xf32>
    %88 = vector.broadcast %87 : vector<8x1xf32> to vector<8x128xf32>
    %89 = arith.mulf %88, %3 : vector<8x128xf32>
    %90 = arith.addf %85, %89 : vector<8x128xf32>
    %c2_65 = arith.constant 2 : index
    %c2_66 = arith.constant 2 : index
    %c0_67 = arith.constant 0 : index
    %c0_68 = arith.constant 0 : index
    %91 = vector.load %arg2[%c2_65, %c2_66, %c0_67, %c0_68] : memref<4x4x8x1xf32, #tpu.memory_space<vmem>>, vector<1x1x8x1xf32>
    %92 = vector.shape_cast %91 : vector<1x1x8x1xf32> to vector<8x1xf32>
    %93 = vector.broadcast %92 : vector<8x1xf32> to vector<8x128xf32>
    %94 = arith.mulf %93, %5 : vector<8x128xf32>
    %95 = arith.addf %90, %94 : vector<8x128xf32>
    %c2_69 = arith.constant 2 : index
    %c3_70 = arith.constant 3 : index
    %c0_71 = arith.constant 0 : index
    %c0_72 = arith.constant 0 : index
    %96 = vector.load %arg2[%c2_69, %c3_70, %c0_71, %c0_72] : memref<4x4x8x1xf32, #tpu.memory_space<vmem>>, vector<1x1x8x1xf32>
    %97 = vector.shape_cast %96 : vector<1x1x8x1xf32> to vector<8x1xf32>
    %98 = vector.broadcast %97 : vector<8x1xf32> to vector<8x128xf32>
    %99 = arith.mulf %98, %7 : vector<8x128xf32>
    %100 = arith.addf %95, %99 : vector<8x128xf32>
    %c2_73 = arith.constant 2 : index
    %c0_74 = arith.constant 0 : index
    %c0_75 = arith.constant 0 : index
    %101 = vector.load %arg4[%c2_73, %c0_74, %c0_75] : memref<4x8x1xf32, #tpu.memory_space<vmem>>, vector<1x8x1xf32>
    %102 = vector.shape_cast %101 : vector<1x8x1xf32> to vector<8x1xf32>
    %103 = vector.broadcast %102 : vector<8x1xf32> to vector<8x128xf32>
    %104 = arith.mulf %100, %103 : vector<8x128xf32>
    %105 = arith.addf %72, %104 : vector<8x128xf32>
    %106 = arith.mulf %100, %100 : vector<8x128xf32>
    %107 = arith.addf %74, %106 : vector<8x128xf32>
    %108 = arith.mulf %102, %102 : vector<8x1xf32>
    %109 = arith.addf %76, %108 : vector<8x1xf32>
    %c3_76 = arith.constant 3 : index
    %c0_77 = arith.constant 0 : index
    %c0_78 = arith.constant 0 : index
    %110 = vector.load %arg3[%c3_76, %c0_77, %c0_78] : memref<4x8x1xf32, #tpu.memory_space<vmem>>, vector<1x8x1xf32>
    %111 = vector.shape_cast %110 : vector<1x8x1xf32> to vector<8x1xf32>
    %112 = vector.shape_cast %111 : vector<8x1xf32> to vector<8x1xf32>
    %113 = vector.broadcast %112 : vector<8x1xf32> to vector<8x128xf32>
    %c3_79 = arith.constant 3 : index
    %c0_80 = arith.constant 0 : index
    %c0_81 = arith.constant 0 : index
    %c0_82 = arith.constant 0 : index
    %114 = vector.load %arg2[%c3_79, %c0_80, %c0_81, %c0_82] : memref<4x4x8x1xf32, #tpu.memory_space<vmem>>, vector<1x1x8x1xf32>
    %115 = vector.shape_cast %114 : vector<1x1x8x1xf32> to vector<8x1xf32>
    %116 = vector.broadcast %115 : vector<8x1xf32> to vector<8x128xf32>
    %117 = arith.mulf %116, %1 : vector<8x128xf32>
    %118 = arith.addf %113, %117 : vector<8x128xf32>
    %c3_83 = arith.constant 3 : index
    %c1_84 = arith.constant 1 : index
    %c0_85 = arith.constant 0 : index
    %c0_86 = arith.constant 0 : index
    %119 = vector.load %arg2[%c3_83, %c1_84, %c0_85, %c0_86] : memref<4x4x8x1xf32, #tpu.memory_space<vmem>>, vector<1x1x8x1xf32>
    %120 = vector.shape_cast %119 : vector<1x1x8x1xf32> to vector<8x1xf32>
    %121 = vector.broadcast %120 : vector<8x1xf32> to vector<8x128xf32>
    %122 = arith.mulf %121, %3 : vector<8x128xf32>
    %123 = arith.addf %118, %122 : vector<8x128xf32>
    %c3_87 = arith.constant 3 : index
    %c2_88 = arith.constant 2 : index
    %c0_89 = arith.constant 0 : index
    %c0_90 = arith.constant 0 : index
    %124 = vector.load %arg2[%c3_87, %c2_88, %c0_89, %c0_90] : memref<4x4x8x1xf32, #tpu.memory_space<vmem>>, vector<1x1x8x1xf32>
    %125 = vector.shape_cast %124 : vector<1x1x8x1xf32> to vector<8x1xf32>
    %126 = vector.broadcast %125 : vector<8x1xf32> to vector<8x128xf32>
    %127 = arith.mulf %126, %5 : vector<8x128xf32>
    %128 = arith.addf %123, %127 : vector<8x128xf32>
    %c3_91 = arith.constant 3 : index
    %c3_92 = arith.constant 3 : index
    %c0_93 = arith.constant 0 : index
    %c0_94 = arith.constant 0 : index
    %129 = vector.load %arg2[%c3_91, %c3_92, %c0_93, %c0_94] : memref<4x4x8x1xf32, #tpu.memory_space<vmem>>, vector<1x1x8x1xf32>
    %130 = vector.shape_cast %129 : vector<1x1x8x1xf32> to vector<8x1xf32>
    %131 = vector.broadcast %130 : vector<8x1xf32> to vector<8x128xf32>
    %132 = arith.mulf %131, %7 : vector<8x128xf32>
    %133 = arith.addf %128, %132 : vector<8x128xf32>
    %c3_95 = arith.constant 3 : index
    %c0_96 = arith.constant 0 : index
    %c0_97 = arith.constant 0 : index
    %134 = vector.load %arg4[%c3_95, %c0_96, %c0_97] : memref<4x8x1xf32, #tpu.memory_space<vmem>>, vector<1x8x1xf32>
    %135 = vector.shape_cast %134 : vector<1x8x1xf32> to vector<8x1xf32>
    %136 = vector.broadcast %135 : vector<8x1xf32> to vector<8x128xf32>
    %137 = arith.mulf %133, %136 : vector<8x128xf32>
    %138 = arith.addf %105, %137 : vector<8x128xf32>
    %139 = arith.mulf %133, %133 : vector<8x128xf32>
    %140 = arith.addf %107, %139 : vector<8x128xf32>
    %141 = arith.mulf %135, %135 : vector<8x1xf32>
    %142 = arith.addf %109, %141 : vector<8x1xf32>
    %143 = vector.broadcast %142 : vector<8x1xf32> to vector<8x128xf32>
    %144 = arith.mulf %140, %143 : vector<8x128xf32>
    %145 = math.sqrt %144 : vector<8x128xf32>
    %cst_98 = arith.constant 9.99999993E-9 : f32
    %146 = vector.broadcast %cst_98 : f32 to vector<8x128xf32>
    %147 = arith.maximumf %145, %146 : vector<8x128xf32>
    %148 = tpu.reciprocal %147 {approx = true} : vector<8x128xf32> -> vector<8x128xf32>
    %149 = arith.mulf %147, %148 : vector<8x128xf32>
    %cst_99 = arith.constant 2.000000e+00 : f32
    %150 = vector.broadcast %cst_99 : f32 to vector<8x128xf32>
    %151 = arith.subf %150, %149 : vector<8x128xf32>
    %152 = arith.mulf %148, %151 : vector<8x128xf32>
    %153 = arith.mulf %138, %152 : vector<8x128xf32>
    %cst_100 = arith.constant 9.900000e-01 : f32
    %154 = vector.broadcast %cst_100 : f32 to vector<8x128xf32>
    %155 = arith.mulf %153, %154 : vector<8x128xf32>
    %cst_101 = arith.constant -1.000000e+00 : f32
    %cst_102 = arith.constant 1.000000e+00 : f32
    %156 = vector.broadcast %cst_101 : f32 to vector<8x128xf32>
    %157 = arith.maximumf %156, %155 : vector<8x128xf32>
    %158 = vector.broadcast %cst_102 : f32 to vector<8x128xf32>
    %159 = arith.minimumf %158, %157 : vector<8x128xf32>
    %cst_103 = arith.constant 1.000000e+00 : f32
    %160 = vector.broadcast %cst_103 : f32 to vector<8x128xf32>
    %161 = arith.subf %160, %159 : vector<8x128xf32>
    %cst_104 = arith.constant 1.000000e+00 : f32
    %162 = vector.broadcast %cst_104 : f32 to vector<8x128xf32>
    %163 = arith.addf %162, %159 : vector<8x128xf32>
    %cst_105 = arith.constant 9.99999996E-13 : f32
    %164 = vector.broadcast %cst_105 : f32 to vector<8x128xf32>
    %165 = arith.maximumf %163, %164 : vector<8x128xf32>
    %166 = tpu.reciprocal %165 {approx = true} : vector<8x128xf32> -> vector<8x128xf32>
    %167 = arith.mulf %165, %166 : vector<8x128xf32>
    %cst_106 = arith.constant 2.000000e+00 : f32
    %168 = vector.broadcast %cst_106 : f32 to vector<8x128xf32>
    %169 = arith.subf %168, %167 : vector<8x128xf32>
    %170 = arith.mulf %166, %169 : vector<8x128xf32>
    %171 = arith.mulf %161, %170 : vector<8x128xf32>
    %cst_107 = arith.constant 0.000000e+00 : f32
    %172 = vector.broadcast %cst_107 : f32 to vector<8x128xf32>
    %173 = arith.maximumf %171, %172 : vector<8x128xf32>
    %174 = math.sqrt %173 : vector<8x128xf32>
    %cst_108 = arith.constant 2.41421366 : f32
    %175 = vector.broadcast %cst_108 : f32 to vector<8x128xf32>
    %176 = arith.cmpf ogt, %174, %175 : vector<8x128xf32>
    %cst_109 = arith.constant dense<true> : vector<8x128xi1>
    %177 = arith.xori %176, %cst_109 : vector<8x128xi1>
    %cst_110 = arith.constant 0.414213568 : f32
    %178 = vector.broadcast %cst_110 : f32 to vector<8x128xf32>
    %179 = arith.cmpf ogt, %174, %178 : vector<8x128xf32>
    %180 = arith.andi %177, %179 : vector<8x128xi1>
    %cst_111 = arith.constant 9.99999968E-21 : f32
    %181 = vector.broadcast %cst_111 : f32 to vector<8x128xf32>
    %182 = arith.maximumf %174, %181 : vector<8x128xf32>
    %183 = tpu.reciprocal %182 {approx = true} : vector<8x128xf32> -> vector<8x128xf32>
    %184 = arith.mulf %182, %183 : vector<8x128xf32>
    %cst_112 = arith.constant 2.000000e+00 : f32
    %185 = vector.broadcast %cst_112 : f32 to vector<8x128xf32>
    %186 = arith.subf %185, %184 : vector<8x128xf32>
    %187 = arith.mulf %183, %186 : vector<8x128xf32>
    %cst_113 = arith.constant 1.000000e+00 : f32
    %188 = vector.broadcast %cst_113 : f32 to vector<8x128xf32>
    %189 = arith.addf %174, %188 : vector<8x128xf32>
    %190 = tpu.reciprocal %189 {approx = true} : vector<8x128xf32> -> vector<8x128xf32>
    %191 = arith.mulf %189, %190 : vector<8x128xf32>
    %cst_114 = arith.constant 2.000000e+00 : f32
    %192 = vector.broadcast %cst_114 : f32 to vector<8x128xf32>
    %193 = arith.subf %192, %191 : vector<8x128xf32>
    %194 = arith.mulf %190, %193 : vector<8x128xf32>
    %cst_115 = arith.constant 0.000000e+00 : f32
    %195 = vector.broadcast %cst_115 : f32 to vector<8x128xf32>
    %196 = arith.subf %195, %187 : vector<8x128xf32>
    %cst_116 = arith.constant 1.000000e+00 : f32
    %197 = vector.broadcast %cst_116 : f32 to vector<8x128xf32>
    %198 = arith.subf %174, %197 : vector<8x128xf32>
    %199 = arith.mulf %198, %194 : vector<8x128xf32>
    %200 = arith.select %180, %199, %174 : vector<8x128xi1>, vector<8x128xf32>
    %201 = arith.select %176, %196, %200 : vector<8x128xi1>, vector<8x128xf32>
    %cst_117 = arith.constant 0.785398185 : f32
    %cst_118 = arith.constant 0.000000e+00 : f32
    %202 = vector.broadcast %cst_117 : f32 to vector<8x128xf32>
    %203 = vector.broadcast %cst_118 : f32 to vector<8x128xf32>
    %204 = arith.select %180, %202, %203 : vector<8x128xi1>, vector<8x128xf32>
    %cst_119 = arith.constant 1.57079637 : f32
    %205 = vector.broadcast %cst_119 : f32 to vector<8x128xf32>
    %206 = arith.select %176, %205, %204 : vector<8x128xi1>, vector<8x128xf32>
    %207 = arith.mulf %201, %201 : vector<8x128xf32>
    %cst_120 = arith.constant 0.0805374458 : f32
    %208 = vector.broadcast %cst_120 : f32 to vector<8x128xf32>
    %209 = arith.mulf %208, %207 : vector<8x128xf32>
    %cst_121 = arith.constant 0.138776854 : f32
    %210 = vector.broadcast %cst_121 : f32 to vector<8x128xf32>
    %211 = arith.subf %209, %210 : vector<8x128xf32>
    %212 = arith.mulf %211, %207 : vector<8x128xf32>
    %cst_122 = arith.constant 0.199777111 : f32
    %213 = vector.broadcast %cst_122 : f32 to vector<8x128xf32>
    %214 = arith.addf %212, %213 : vector<8x128xf32>
    %215 = arith.mulf %214, %207 : vector<8x128xf32>
    %cst_123 = arith.constant 0.333329499 : f32
    %216 = vector.broadcast %cst_123 : f32 to vector<8x128xf32>
    %217 = arith.subf %215, %216 : vector<8x128xf32>
    %218 = arith.mulf %217, %207 : vector<8x128xf32>
    %219 = arith.mulf %218, %201 : vector<8x128xf32>
    %220 = arith.addf %206, %219 : vector<8x128xf32>
    %221 = arith.addf %220, %201 : vector<8x128xf32>
    %cst_124 = arith.constant 2.000000e+00 : f32
    %222 = vector.broadcast %cst_124 : f32 to vector<8x128xf32>
    %223 = arith.mulf %222, %221 : vector<8x128xf32>
    %c0_125 = arith.constant 0 : index
    %c0_126 = arith.constant 0 : index
    %224 = vector.load %arg5[%c0_125, %c0_126] : memref<8x128xf32, #tpu.memory_space<vmem>>, vector<8x128xf32>
    tpu.vector_store %arg5[%c0_125, %c0_126], %223 {strides = array<i32>} : memref<8x128xf32, #tpu.memory_space<vmem>>, vector<8x128xf32>,
    return
  }
  func.func @transform_0(%arg0: i32) -> (i32, i32, i32) {
    %c0_i32 = arith.constant 0 : i32
    %c0_i32_0 = arith.constant 0 : i32
    %c0_i32_1 = arith.constant 0 : i32
    return %c0_i32, %arg0, %c0_i32_0 : i32, i32, i32
  }
  func.func @transform_1(%arg0: i32) -> (i32, i32, i32, i32) {
    %c0_i32 = arith.constant 0 : i32
    %c0_i32_0 = arith.constant 0 : i32
    %c0_i32_1 = arith.constant 0 : i32
    %c0_i32_2 = arith.constant 0 : i32
    return %c0_i32, %c0_i32_0, %arg0, %c0_i32_1 : i32, i32, i32, i32
  }
  func.func @transform_2(%arg0: i32) -> (i32, i32, i32) {
    %c0_i32 = arith.constant 0 : i32
    %c0_i32_0 = arith.constant 0 : i32
    %c0_i32_1 = arith.constant 0 : i32
    return %c0_i32, %arg0, %c0_i32_0 : i32, i32, i32
  }
  func.func @transform_3(%arg0: i32) -> (i32, i32, i32) {
    %c0_i32 = arith.constant 0 : i32
    %c0_i32_0 = arith.constant 0 : i32
    %c0_i32_1 = arith.constant 0 : i32
    return %c0_i32, %arg0, %c0_i32_0 : i32, i32, i32
  }
  func.func @transform_4(%arg0: i32) -> (i32, i32) {
    %c0_i32 = arith.constant 0 : i32
    %c0_i32_0 = arith.constant 0 : i32
    return %arg0, %c0_i32 : i32, i32
  }
}

</mosaic_0001>

<bundles_post_ra>
// kernel: tpu_custom_call.1
= control target key start
LH: loop header
LB: loop body
LE: loop exit
PB: predicated region body
PF: predicated region fallthrough
CT: control target
= control target key end

     0   :  { %v417_v3 = vmov 0   ;;  %s536_s0 = inlined_call_operand.vmem [shape: f32[4,8,128], index: 0, kind: input, shape index: {}]   ;;  %s537_s1 = inlined_call_operand.vmem [shape: f32[4,4,8,1], index: 1, kind: input, shape index: {}]   ;;  %s538_s2 = inlined_call_operand.vmem [shape: f32[4,8,1], index: 2, kind: input, shape index: {}]   ;;  %s539_s3 = inlined_call_operand.vmem [shape: f32[4,8,1], index: 3, kind: input, shape index: {}]   ;;  %s540_s4 = inlined_call_operand.hbm [shape: f32[8,128], index: 4, kind: output, shape index: {}]  }
   0x1   :  { %v350_v0 = vld [vmem:[%s538_s2 + $0x8] sm:$0xff]  ;;  %v31_v1 = vld [vmem:[%s537_s1] sm:$0xff]  ;;  %378 = vset.pattern.permute.xlu2 %v417_v3  ;;  %377 = vset.pattern.permute.xlu1 %v417_v3 }
   0x2   :  { %v25_v2 = vld [vmem:[%s538_s2] sm:$0xff]  ;;  %376 = vset.pattern.permute.xlu0 %v417_v3  ;;  %82 = vperm.xlu2 %378, %v350_v0  }
   0x3   :  { %34 = vperm.xlu0 %376, %v31_v1   ;;  %28 = vperm.xlu1 %377, %v25_v2  }
   0x4   :  { %9 = vsyncpa [#allocation3], 0  ;;  %v352_v4 = vld [vmem:[%s537_s1 + $0x28] sm:$0xff]  ;;  %v351_v5 = vld [vmem:[%s537_s1 + $0x20] sm:$0xff]  ;;  %vm418_vm5 = vmmov 1   ;;  %s335_s19 = sshll.u32 %s540_s4, 4  ;;  %s336_s19 = int_to_ptr.hbm [resolvable:$true] %s335_s19 }
   0x5   :  { %v347_v6 = vld [vmem:[%s537_s1 + $0x8] sm:$0xff]  ;;  %v353_v7 = vld [vmem:[%s537_s1 + $0x30] sm:$0xff]  ;;  %v357_v8 = vld [vmem:[%s537_s1 + $0x40] sm:$0xff] }
   0x6   :  { %v348_v9 = vld [vmem:[%s537_s1 + $0x10] sm:$0xff]  ;;  %v363_v10 = vld [vmem:[%s537_s1 + $0x60] sm:$0xff]  ;;  %v358_v12 = vld [vmem:[%s537_s1 + $0x48] sm:$0xff] }
   0x7   :  { %v356_v11 = vld [vmem:[%s538_s2 + $0x10] sm:$0xff]  ;;  %v66_v14 = vld [vmem:[%s539_s3] sm:$0xff]  ;;  %v355_v15 = vld [vmem:[%s539_s3 + $0x8] sm:$0xff] }
   0x8   :  { %v359_v13 = vld [vmem:[%s537_s1 + $0x50] sm:$0xff]  ;;  %v349_v16 = vld [vmem:[%s537_s1 + $0x18] sm:$0xff]  ;;  %v76_v18 = vmul.f32 %v66_v14, %v66_v14  ;;  %v132_v19 = vmul.f32 %v355_v15, %v355_v15  ;;  %v364_v26 = vld [vmem:[%s537_s1 + $0x68] sm:$0xff] }
   0x9   :  { %v354_v17 = vld [vmem:[%s537_s1 + $0x38] sm:$0xff]  ;;  %v361_v20 = vld [vmem:[%s539_s3 + $0x10] sm:$0xff]  ;;  %v18_v44 = vld [vmem:[%s536_s0] sm:$0xff] }
   0xa   :  { %98 = vperm.xlu2 %378, %v352_v4   ;;  %v133_v21 = vadd.f32 %v132_v19, %v76_v18  ;;  %v188_v22 = vmul.f32 %v361_v20, %v361_v20  ;;  %v360_v23 = vld [vmem:[%s537_s1 + $0x58] sm:$0xff]  ;;  %v365_v30 = vld [vmem:[%s537_s1 + $0x70] sm:$0xff]  ;;  %v344_v46 = vld [vmem:[%s536_s0 + $0x8] sm:$0xff] }
   0xb   :  { %89 = vperm.xlu0 %376, %v351_v5   ;;  %43 = vperm.xlu1 %377, %v347_v6   ;;  %v367_v24 = vld [vmem:[%s539_s3 + $0x18] sm:$0xff]  ;;  %v345_v55 = vld [vmem:[%s536_s0 + $0x10] sm:$0xff] }
   0xc   :  { %v362_v25 = vld [vmem:[%s538_s2 + $0x18] sm:$0xff]  ;;  %v189_v27 = vadd.f32 %v188_v22, %v133_v21  ;;  %v244_v28 = vmul.f32 %v367_v24, %v367_v24 }
   0xd   :  { %v366_v31 = vld [vmem:[%s537_s1 + $0x78] sm:$0xff] }
   0xe   :  { %v245_v29 = vadd.f32 %v244_v28, %v189_v27  ;;  %v346_v61 = vld [vmem:[%s536_s0 + $0x18] sm:$0xff]  ;;  %s420_s0 = smov [#allocation2]  }
   0xf   :  { %s333_s16 = sshll.u32 %s420_s0, 4  ;;  %s334_s16 = int_to_ptr.vmem [resolvable:$true] %s333_s16 }
  0x12   :  { %107 = vperm.xlu2 %378, %v353_v7  }
  0x13   :  { %145 = vperm.xlu0 %376, %v357_v8   ;;  %52 = vperm.xlu1 %377, %v348_v9  }
  0x1a   :  { %201 = vperm.xlu2 %378, %v363_v10  }
  0x1b   :  { %138 = vperm.xlu0 %376, %v356_v11   ;;  %154 = vperm.xlu1 %377, %v358_v12  }
  0x22   :  { %163 = vperm.xlu2 %378, %v359_v13  }
  0x23   :  { %61 = vperm.xlu0 %376, %v349_v16   ;;  %116 = vperm.xlu1 %377, %v354_v17  }
  0x2a   :  { %172 = vperm.xlu2 %378, %v360_v23  }
  0x2b   :  { %194 = vperm.xlu0 %376, %v362_v25   ;;  %210 = vperm.xlu1 %377, %v364_v26  }
  0x32   :  { %248 = vperm.xlu2 %378, %v245_v29  }
  0x33   :  { %219 = vperm.xlu0 %376, %v365_v30   ;;  %228 = vperm.xlu1 %377, %v366_v31  }
  0x3a   :  { %181 = vperm.xlu2 %378, %v361_v20  }
  0x3b   :  { %69 = vperm.xlu0 %376, %v66_v14   ;;  %125 = vperm.xlu1 %377, %v355_v15  }
  0x43   :  { %237 = vperm.xlu0 %376, %v367_v24  }
  0x5c   :  { %v83_v32 = vpop.permute.xlu2 %82 }
  0x64   :  { %v99_v35 = vpop.permute.xlu2 %98 }
  0x65   :  { %v101_v52 = vmul.f32 %v344_v46, %v99_v35 }
  0x6c   :  { %v108_v38 = vpop.permute.xlu2 %107 }
  0x6d   :  { %v110_v62 = vmul.f32 %v345_v55, %v108_v38 }
  0x74   :  { %v202_v41 = vpop.permute.xlu2 %201 }
  0x75   :  { %v35_v33 = vpop.permute.xlu0 %34  ;;  %v29_v34 = vpop.permute.xlu1 %28  ;;  %v204_v7 = vmul.f32 %v202_v41, %v18_v44 }
  0x76   :  { %v37_v47 = vmul.f32 %v35_v33, %v18_v44 }
  0x78   :  { %v38_v56 = vadd.f32 %v37_v47, %v29_v34 }
  0x7c   :  { %v164_v51 = vpop.permute.xlu2 %163 }
  0x7d   :  { %v90_v36 = vpop.permute.xlu0 %89  ;;  %v44_v37 = vpop.permute.xlu1 %43  ;;  %v166_v8 = vmul.f32 %v345_v55, %v164_v51 }
  0x7e   :  { %v92_v45 = vmul.f32 %v90_v36, %v18_v44  ;;  %v46_v53 = vmul.f32 %v344_v46, %v44_v37 }
  0x80   :  { %v93_v50 = vadd.f32 %v92_v45, %v83_v32  ;;  %v47_v63 = vadd.f32 %v46_v53, %v38_v56 }
  0x82   :  { %v102_v57 = vadd.f32 %v101_v52, %v93_v50 }
  0x84   :  { %v111_v6 = vadd.f32 %v110_v62, %v102_v57  ;;  %v173_v11 = vpop.permute.xlu2 %172 }
  0x85   :  { %v146_v39 = vpop.permute.xlu0 %145  ;;  %v53_v40 = vpop.permute.xlu1 %52  ;;  %v175_v15 = vmul.f32 %v346_v61, %v173_v11 }
  0x86   :  { %v148_v54 = vmul.f32 %v146_v39, %v18_v44  ;;  %v55_v58 = vmul.f32 %v345_v55, %v53_v40 }
  0x88   :  { %v56_v4 = vadd.f32 %v55_v58, %v47_v63 }
  0x8c   :  { %v249_v31 = vpop.permute.xlu2 %248 }
  0x8d   :  { %v139_v42 = vpop.permute.xlu0 %138  ;;  %v155_v43 = vpop.permute.xlu1 %154 }
  0x8e   :  { %v149_v59 = vadd.f32 %v148_v54, %v139_v42  ;;  %v157_v60 = vmul.f32 %v344_v46, %v155_v43 }
  0x90   :  { %v158_v5 = vadd.f32 %v157_v60, %v149_v59 }
  0x92   :  { %v167_v12 = vadd.f32 %v166_v8, %v158_v5 }
  0x94   :  { %v176_v20 = vadd.f32 %v175_v15, %v167_v12 }
  0x95   :  { %v62_v48 = vpop.permute.xlu0 %61  ;;  %v117_v49 = vpop.permute.xlu1 %116 }
  0x96   :  { %v64_v0 = vmul.f32 %v346_v61, %v62_v48  ;;  %v119_v1 = vmul.f32 %v346_v61, %v117_v49  ;;  %v186_v26 = vmul.f32 %v176_v20, %v176_v20  ;;  %v182_v48 = vpop.permute.xlu2 %181 }
  0x97   :  { %v184_v52 = vmul.f32 %v182_v48, %v176_v20 }
  0x98   :  { %v65_v9 = vadd.f32 %v64_v0, %v56_v4  ;;  %v120_v10 = vadd.f32 %v119_v1, %v111_v6 }
  0x9a   :  { %v74_v16 = vmul.f32 %v65_v9, %v65_v9  ;;  %v130_v17 = vmul.f32 %v120_v10, %v120_v10 }
  0x9c   :  { %v131_v25 = vadd.f32 %v130_v17, %v74_v16 }
  0x9d   :  { %v195_v2 = vpop.permute.xlu0 %194  ;;  %v211_v3 = vpop.permute.xlu1 %210 }
  0x9e   :  { %v205_v13 = vadd.f32 %v204_v7, %v195_v2  ;;  %v213_v14 = vmul.f32 %v344_v46, %v211_v3  ;;  %v187_v28 = vadd.f32 %v186_v26, %v131_v25 }
  0xa0   :  { %v214_v21 = vadd.f32 %v213_v14, %v205_v13 }
  0xa5   :  { %v220_v18 = vpop.permute.xlu0 %219  ;;  %v229_v19 = vpop.permute.xlu1 %228 }
  0xa6   :  { %v222_v22 = vmul.f32 %v345_v55, %v220_v18  ;;  %v231_v24 = vmul.f32 %v346_v61, %v229_v19 }
  0xa8   :  { %v223_v23 = vadd.f32 %v222_v22, %v214_v21 }
  0xaa   :  { %v232_v27 = vadd.f32 %v231_v24, %v223_v23 }
  0xac   :  { %v242_v29 = vmul.f32 %v232_v27, %v232_v27 }
  0xad   :  { %v70_v39 = vpop.permute.xlu0 %69  ;;  %v126_v44 = vpop.permute.xlu1 %125 }
  0xae   :  { %v243_v30 = vadd.f32 %v242_v29, %v187_v28  ;;  %v72_v46 = vmul.f32 %v70_v39, %v65_v9  ;;  %v128_v47 = vmul.f32 %v126_v44, %v120_v10  ;;  %v419_v39 = vmov 0.0  }
  0xb0   :  { %v251_v32 = vmul.f32 %v249_v31, %v243_v30  ;;  %v129_v50 = vadd.f32 %v128_v47, %v72_v46 }
  0xb2   :  { %379 = vrsqrt.f32 %v251_v32  ;;  %vm259_vm0 = vcmp.eq.f32.partialorder %v251_v32, inf  ;;  %v262_v41 = vand.u32 2147483648, %v251_v32  ;;  %vm261_vm1 = vcmp.eq.f32.partialorder %v251_v32, 0.0 }
  0xb3   :  { %v185_v55 = vadd.f32 %v184_v52, %v129_v50 }
  0xb5   :  { %v238_v49 = vpop.permute.xlu0 %237 }
  0xb6   :  { %v240_v53 = vmul.f32 %v238_v49, %v232_v27 }
  0xb8   :  { %v380_v33 = vpop.eup %379  ;;  %v241_v57 = vadd.f32 %v240_v53, %v185_v55 }
  0xb9   :  { %v253_v34 = vmul.f32 %v380_v33, %v251_v32 }
  0xbb   :  { %v254_v35 = vmul.f32 %v380_v33, %v253_v34 }
  0xbd   :  { %v255_v36 = vmul.f32 0.5, %v254_v35 }
  0xbf   :  { %v256_v37 = vsub.f32 1.5, %v255_v36 }
  0xc1   :  { %v257_v38 = vmul.f32 %v380_v33, %v256_v37 }
  0xc3   :  { %v258_v40 = vmul.f32 %v257_v38, %v251_v32 }
  0xc5   :  { %v260_v42 = vsel %vm259_vm0, %v251_v32, %v258_v40 }
  0xc6   :  { %v263_v43 = vsel %vm261_vm1, %v262_v41, %v260_v42 }
  0xc7   :  { %v264_v45 = vmax.f32 %v263_v43, 1e-08 }
  0xc9   :  { %381 = vrcp.f32 %v264_v45 }
  0xcf   :  { %v382_v51 = vpop.eup %381 }
  0xd0   :  { %v266_v54 = vmul.f32 %v382_v51, %v264_v45 }
  0xd2   :  { %v267_v56 = vsub.f32 2.0, %v266_v54 }
  0xd4   :  { %v268_v58 = vmul.f32 %v382_v51, %v267_v56 }
  0xd6   :  { %v269_v59 = vmul.f32 %v268_v58, %v241_v57 }
  0xd8   :  { %v270_v60 = vmul.f32 0.99, %v269_v59 }
  0xda   :  { %v368_v61 = vclamps-f32 %v270_v60, 1.0 }
  0xdc   :  { %v274_v62 = vadd.f32 1.0, %v368_v61  ;;  %v273_v3 = vsub.f32 1.0, %v368_v61 }
  0xde   :  { %v275_v63 = vmax.f32 %v274_v62, 1e-12 }
  0xe0   :  { %383 = vrcp.f32 %v275_v63 }
  0xe6   :  { %v384_v0 = vpop.eup %383 }
  0xe7   :  { %v277_v1 = vmul.f32 %v384_v0, %v275_v63 }
  0xe9   :  { %v278_v2 = vsub.f32 2.0, %v277_v1 }
  0xeb   :  { %v279_v4 = vmul.f32 %v384_v0, %v278_v2 }
  0xed   :  { %v280_v5 = vmul.f32 %v279_v4, %v273_v3 }
  0xef   :  { %v281_v6 = vmax.f32 %v280_v5, 0.0 }
  0xf1   :  { %385 = vrsqrt.f32 %v281_v6  ;;  %vm289_vm2 = vcmp.eq.f32.partialorder %v281_v6, inf  ;;  %v292_v14 = vand.u32 2147483648, %v281_v6  ;;  %vm291_vm3 = vcmp.eq.f32.partialorder %v281_v6, 0.0 }
  0xf7   :  { %v386_v7 = vpop.eup %385 }
  0xf8   :  { %v283_v8 = vmul.f32 %v386_v7, %v281_v6 }
  0xfa   :  { %v284_v9 = vmul.f32 %v386_v7, %v283_v8 }
  0xfc   :  { %v285_v10 = vmul.f32 0.5, %v284_v9 }
  0xfe   :  { %v286_v11 = vsub.f32 1.5, %v285_v10 }
 0x100   :  { %v287_v12 = vmul.f32 %v386_v7, %v286_v11 }
 0x102   :  { %v288_v13 = vmul.f32 %v287_v12, %v281_v6 }
 0x104   :  { %v290_v15 = vsel %vm289_vm2, %v281_v6, %v288_v13 }
 0x105   :  { %v293_v16 = vsel %vm291_vm3, %v292_v14, %v290_v15 }
 0x106   :  { %v298_v17 = vmax.f32 %v293_v16, 1e-20  ;;  %v303_v18 = vadd.f32 1.0, %v293_v16  ;;  %vm294_vm4 = vcmp.gt.f32.partialorder %v293_v16, 2.4142137  ;;  %v369_v27 = vadd.f32 -1.0, %v293_v16 }
 0x107   :  { %vm295_vm6 = vmxor %vm294_vm4, %vm418_vm5  ;;  %vm296_vm7 = vcmp.gt.f32.partialorder %v293_v16, 0.41421357 }
 0x108   :  { %387 = vrcp.f32 %v298_v17  ;;  %vm297_vm8 = vmand %vm295_vm6, %vm296_vm7 }
 0x109   :  { %389 = vrcp.f32 %v303_v18  ;;  %v313_v40 = vsel %vm297_vm8, 0.7853982, %v419_v39 }
 0x10a   :  { %v314_v43 = vsel %vm294_vm4, 1.5707964, %v313_v40 }
 0x10e   :  { %v388_v19 = vpop.eup %387 }
 0x10f   :  { %v390_v20 = vpop.eup %389  ;;  %v300_v21 = vmul.f32 %v388_v19, %v298_v17 }
 0x110   :  { %v305_v22 = vmul.f32 %v390_v20, %v303_v18 }
 0x111   :  { %v301_v23 = vsub.f32 2.0, %v300_v21 }
 0x112   :  { %v306_v24 = vsub.f32 2.0, %v305_v22 }
 0x113   :  { %v302_v25 = vmul.f32 %v388_v19, %v301_v23 }
 0x114   :  { %v307_v26 = vmul.f32 %v390_v20, %v306_v24 }
 0x115   :  { %v308_v28 = vsub.f32 0.0, %v302_v25 }
 0x116   :  { %v310_v29 = vmul.f32 %v369_v27, %v307_v26 }
 0x118   :  { %v311_v30 = vsel %vm297_vm8, %v310_v29, %v293_v16 }
 0x119   :  { %v312_v31 = vsel %vm294_vm4, %v308_v28, %v311_v30 }
 0x11a   :  { %v315_v32 = vmul.f32 %v312_v31, %v312_v31 }
 0x11c   :  { %v316_v33 = vmul.f32 0.080537446, %v315_v32 }
 0x11e   :  { %v370_v34 = vadd.f32 -0.13877685, %v316_v33 }
 0x120   :  { %v318_v35 = vmul.f32 %v370_v34, %v315_v32 }
 0x122   :  { %v319_v36 = vadd.f32 0.19977711, %v318_v35 }
 0x124   :  { %v320_v37 = vmul.f32 %v319_v36, %v315_v32 }
 0x126   :  { %v371_v38 = vadd.f32 -0.3333295, %v320_v37 }
 0x128   :  { %v322_v41 = vmul.f32 %v371_v38, %v315_v32 }
 0x12a   :  { %v323_v42 = vmul.f32 %v322_v41, %v312_v31 }
 0x12c   :  { %v324_v44 = vadd.f32 %v323_v42, %v314_v43 }
 0x12e   :  { %v325_v45 = vadd.f32 %v324_v44, %v312_v31 }
 0x130   :  { %v326_v46 = vmul.f32 2.0, %v325_v45 }
 0x132   :  { %327 = vst [vmem:[#allocation2] sm:$0xff] %v326_v46 }
 0x133   :  { %338 = dma.vmem_to_hbm [thread:$0]  %s334_s16, 128, %s336_s19, [#allocation3]  }
 0x134   :  { %415 = dma.done.wait [#allocation3], 128  }
 0x135   :  { %416 = vsyncadd [#allocation3], 4294967168 }
 0x136   :  { %343 = vsyncpa [#allocation3], 1 }

</bundles_post_ra>
